<compile_context>
chip_gen: v5e
topology: v5e:2x2
jax: 0.10.0
libtpu: 0.0.40
codegen_flags: <defaults>
</compile_context>

<pallas_src>
import numpy as np
import jax
import jax.numpy as jnp
from jax.experimental import pallas as pl
from jax.experimental.pallas import tpu as pltpu

EMBED_SIZE = 32
HIDDEN_SIZE = 32
VOCAB_SIZE = 50
NODE_PAD = 8      # nodes per level, padded to a sublane multiple
CHILD_PAD = 4     # max children per node (padded slots are all-zero gmat rows)


def _tree_lstm_kernel(x_ref, g_ref, w_ref, u_ref, bw_ref, bu_ref,
                      h_out_ref, c_out_ref, h_prev, c_prev):
    # Gate packing order along lanes: [i | f | o | u], each HIDDEN_SIZE wide.
    lvl = pl.program_id(0)
    n, h = h_out_ref.shape
    cn = g_ref.shape[1]
    c_slots = cn // n

    @pl.when(lvl == 0)
    def _():
        h_prev[...] = jnp.zeros_like(h_prev)
        c_prev[...] = jnp.zeros_like(c_prev)

    x = x_ref[0]                 # (N, E)
    gm = g_ref[0]                # (C*N, N) 0/1 child-select matrix, child-major rows
    w = w_ref[...]               # (E, 4H)
    u = u_ref[...]               # (H, 4H)

    # Input path for all four gates in one lane-dense MXU pass: (N, 4H).
    wx = jnp.dot(x, w, preferred_element_type=jnp.float32) + bw_ref[...]

    # Child gather as a select matmul; zero rows of gm => zero contribution
    # (leaves / padded slots), so no mask is needed anywhere.
    hp = h_prev[...]
    cp = c_prev[...]
    hc = jnp.dot(gm, hp, preferred_element_type=jnp.float32)    # (C*N, H)
    cc = jnp.dot(gm, cp, preferred_element_type=jnp.float32)    # (C*N, H)

    # Child-sum h_tilde: tile-aligned static sublane slices, C-1 VPU adds.
    h_tilde = hc[0:n]
    for ci in range(1, c_slots):
        h_tilde = h_tilde + hc[ci * n:(ci + 1) * n]

    # Recurrent path for all four gates in one lane-dense MXU pass
    # (the f slice of this result is unused; per-child forget is computed below).
    uh = jnp.dot(h_tilde, u, preferred_element_type=jnp.float32) + bu_ref[...]
    pre = wx + uh                                               # (N, 4H)
    i_j = jax.nn.sigmoid(pre[:, 0:h])
    o_j = jax.nn.sigmoid(pre[:, 2 * h:3 * h])
    u_j = jnp.tanh(pre[:, 3 * h:4 * h])

    # Per-child forget gates: batch all C*N child slots through U_f in one dot.
    wxf = wx[:, h:2 * h] + bu_ref[0:1, h:2 * h]                 # (N, H) = W_f x + b_wf + b_uf
    uhc_f = jnp.dot(hc, u[:, h:2 * h], preferred_element_type=jnp.float32)  # (C*N, H)
    f_pre = jnp.concatenate([wxf] * c_slots, axis=0) + uhc_f    # broadcast over child slots
    f_cc = jax.nn.sigmoid(f_pre) * cc                           # (C*N, H)
    sum_c = f_cc[0:n]
    for ci in range(1, c_slots):
        sum_c = sum_c + f_cc[ci * n:(ci + 1) * n]

    c_j = i_j * u_j + sum_c
    h_j = o_j * jnp.tanh(c_j)

    # Carry state to the next level (VMEM-resident) and write outputs
    # (constant out block index => last level's values are what lands in HBM).
    h_prev[...] = h_j
    c_prev[...] = c_j
    h_out_ref[...] = h_j
    c_out_ref[...] = c_j


@jax.jit
def _tree_lstm_fused(x_lvl, gmat, w_packed, u_packed, bw_packed, bu_packed):
    L, N, E = x_lvl.shape
    CN = gmat.shape[1]
    H = u_packed.shape[0]
    out_shape = (jax.ShapeDtypeStruct((N, H), jnp.float32),
                 jax.ShapeDtypeStruct((N, H), jnp.float32))
    return pl.pallas_call(
        _tree_lstm_kernel,
        out_shape=out_shape,
        grid_spec=pltpu.PrefetchScalarGridSpec(
            num_scalar_prefetch=0,
            grid=(L,),
            in_specs=[
                # per-level streamed inputs
                pl.BlockSpec((1, N, E), lambda g: (g, 0, 0)),
                pl.BlockSpec((1, CN, N), lambda g: (g, 0, 0)),
                # weights: constant block index -> loaded once, VMEM-resident
                pl.BlockSpec(w_packed.shape, lambda g: (0, 0)),
                pl.BlockSpec(u_packed.shape, lambda g: (0, 0)),
                pl.BlockSpec(bw_packed.shape, lambda g: (0, 0)),
                pl.BlockSpec(bu_packed.shape, lambda g: (0, 0)),
            ],
            out_specs=[
                pl.BlockSpec((N, H), lambda g: (0, 0)),
                pl.BlockSpec((N, H), lambda g: (0, 0)),
            ],
            scratch_shapes=[pltpu.VMEM((N, H), jnp.float32),
                            pltpu.VMEM((N, H), jnp.float32)],
        ),
        compiler_params=pltpu.CompilerParams(
            dimension_semantics=("arbitrary",)),   # levels are sequentially dependent
    )(x_lvl, gmat, w_packed, u_packed, bw_packed, bu_packed)


class DependencyTreeLSTMPallas:
    """JAX/Pallas equivalent of the torch DependencyTreeLSTM forward pass."""

    def __init__(self, embed_size, hidden_size, vocab_size, key):
        keys = jax.random.split(key, 5)
        se = 1.0 / np.sqrt(embed_size)
        sh = 1.0 / np.sqrt(hidden_size)
        self.embed_size = embed_size
        self.hidden_size = hidden_size
        # nn.Embedding(vocab, embed) weight (deterministic synthetic init)
        self.embedding = jax.random.normal(
            keys[0], (vocab_size, embed_size), jnp.float32)
        # per-gate params, gate order [i, f, o, u]
        W = jax.random.uniform(keys[1], (4, embed_size, hidden_size), jnp.float32, -se, se)
        bw = jax.random.uniform(keys[2], (4, hidden_size), jnp.float32, -se, se)
        U = jax.random.uniform(keys[3], (4, hidden_size, hidden_size), jnp.float32, -sh, sh)
        bu = jax.random.uniform(keys[4], (4, hidden_size), jnp.float32, -sh, sh)
        # pack gates along the lane axis: (E, 4H), (H, 4H), (1, 4H)
        self.Wp = jnp.transpose(W, (1, 0, 2)).reshape(embed_size, 4 * hidden_size)
        self.Up = jnp.transpose(U, (1, 0, 2)).reshape(hidden_size, 4 * hidden_size)
        self.bwp = bw.reshape(1, 4 * hidden_size)
        self.bup = bu.reshape(1, 4 * hidden_size)

    def forward(self, dependency_tree, input_seq):
        L = len(dependency_tree)
        # Static structure tables (numpy, baked at trace time).
        word_idx = np.zeros((L, NODE_PAD), np.int32)
        gmat = np.zeros((L, CHILD_PAD * NODE_PAD, NODE_PAD), np.float32)
        for li, level in enumerate(dependency_tree):
            assert len(level) <= NODE_PAD, "level exceeds NODE_PAD"
            for ni, node in enumerate(level):
                word_idx[li, ni] = node[0]
                if li == 0:
                    # first level == leaves: the torch module skips the child loop,
                    # so sentinel child entries (e.g. -1) are ignored here too.
                    continue
                children = node[1]
                assert len(children) <= CHILD_PAD, "node exceeds CHILD_PAD children"
                for ci, ch in enumerate(children):
                    assert 0 <= ch < len(dependency_tree[li - 1]), \
                        "child index out of range for previous level"
                    gmat[li, ci * NODE_PAD + ni, ch] = 1.0

        emb_seq = self.embedding[jnp.asarray(input_seq, jnp.int32)]   # (S, E)
        # one static gather for the whole tree: (L, NODE_PAD, E)
        x_lvl = emb_seq[jnp.asarray(word_idx)]

        h_out, c_out = _tree_lstm_fused(
            x_lvl, jnp.asarray(gmat), self.Wp, self.Up, self.bwp, self.bup)

        # Match torch return: lists of per-node (hidden_size,) vectors of the last level.
        n_last = len(dependency_tree[-1])
        h_list = [h_out[i] for i in range(n_last)]
        c_list = [c_out[i] for i in range(n_last)]
        return h_list, c_list


if __name__ == "__main__":
    key = jax.random.PRNGKey(0)
    k_model, k_seq = jax.random.split(key)

    model = DependencyTreeLSTMPallas(EMBED_SIZE, HIDDEN_SIZE, VOCAB_SIZE, k_model)

    # sequence of 8 token ids
    input_seq = [int(t) for t in
                 np.array(jax.random.randint(k_seq, (8,), 0, VOCAB_SIZE))]

    # Tree processed bottom-up:
    #   level 0: leaves (single sentinel "child" entry, as the torch module expects)
    #   later levels: node = (word_index, [child indices into previous level])
    dependency_tree = [
        [(0, [-1]), (1, [-1]), (2, [-1]), (3, [-1]), (4, [-1]), (5, [-1])],
        [(6, [0, 1, 2]), (7, [3, 4, 5])],
        [(2, [0, 1])],
    ]

    h_list, c_list = model.forward(dependency_tree, input_seq)
    jax.block_until_ready(h_list[0])
    jax.block_until_ready(c_list[0])

    assert h_list[0].shape == (HIDDEN_SIZE,) and c_list[0].shape == (HIDDEN_SIZE,)
    assert bool(jnp.all(jnp.isfinite(h_list[0]))) and bool(jnp.all(jnp.isfinite(c_list[0])))
    print("KERNEL_OK")
</pallas_src>

<mosaic_0001>
module attributes {stable_mosaic.version = 11 : i64} {
  func.func @_tree_lstm_kernel(%arg0: i32, %arg1: memref<1x8x32xf32, #tpu.memory_space<vmem>>, %arg2: memref<1x32x8xf32, #tpu.memory_space<vmem>>, %arg3: memref<32x128xf32, #tpu.memory_space<vmem>>, %arg4: memref<32x128xf32, #tpu.memory_space<vmem>>, %arg5: memref<1x128xf32, #tpu.memory_space<vmem>>, %arg6: memref<1x128xf32, #tpu.memory_space<vmem>>, %arg7: memref<8x32xf32, #tpu.memory_space<vmem>>, %arg8: memref<8x32xf32, #tpu.memory_space<vmem>>, %arg9: memref<8x32xf32, #tpu.memory_space<vmem>>, %arg10: memref<8x32xf32, #tpu.memory_space<vmem>>) attributes {dimension_semantics = [#tpu.dimension_semantics<arbitrary>], iteration_bounds = array<i64: 3>, scalar_prefetch = 0 : i64, scratch_operands = 2 : i64, tpu.core_type = #tpu.core_type<tc>, window_params = [{transform_indices = @transform_0, window_bounds = array<i64: 1, 8, 32>}, {transform_indices = @transform_1, window_bounds = array<i64: 1, 32, 8>}, {pipeline_mode = #tpu.pipeline_mode<synchronous>, transform_indices = @transform_2, window_bounds = array<i64: 32, 128>}, {pipeline_mode = #tpu.pipeline_mode<synchronous>, transform_indices = @transform_3, window_bounds = array<i64: 32, 128>}, {pipeline_mode = #tpu.pipeline_mode<synchronous>, transform_indices = @transform_4, window_bounds = array<i64: 1, 128>}, {pipeline_mode = #tpu.pipeline_mode<synchronous>, transform_indices = @transform_5, window_bounds = array<i64: 1, 128>}, {pipeline_mode = #tpu.pipeline_mode<synchronous>, transform_indices = @transform_6, window_bounds = array<i64: 8, 32>}, {pipeline_mode = #tpu.pipeline_mode<synchronous>, transform_indices = @transform_7, window_bounds = array<i64: 8, 32>}]} {
    %c0_i32 = arith.constant 0 : i32
    %0 = arith.cmpi eq, %arg0, %c0_i32 : i32
    %1 = arith.extui %0 : i1 to i32
    %c0_i32_0 = arith.constant 0 : i32
    %2 = arith.cmpi ne, %1, %c0_i32_0 : i32
    scf.if %2 {
      %cst_34 = arith.constant 0.000000e+00 : f32
      %72 = vector.broadcast %cst_34 : f32 to vector<8x32xf32>
      %c0_35 = arith.constant 0 : index
      %c0_36 = arith.constant 0 : index
      %73 = vector.load %arg9[%c0_35, %c0_36] : memref<8x32xf32, #tpu.memory_space<vmem>>, vector<8x32xf32>
      tpu.vector_store %arg9[%c0_35, %c0_36], %72 {strides = array<i32>} : memref<8x32xf32, #tpu.memory_space<vmem>>, vector<8x32xf32>,
      %cst_37 = arith.constant 0.000000e+00 : f32
      %74 = vector.broadcast %cst_37 : f32 to vector<8x32xf32>
      %c0_38 = arith.constant 0 : index
      %c0_39 = arith.constant 0 : index
      %75 = vector.load %arg10[%c0_38, %c0_39] : memref<8x32xf32, #tpu.memory_space<vmem>>, vector<8x32xf32>
      tpu.vector_store %arg10[%c0_38, %c0_39], %74 {strides = array<i32>} : memref<8x32xf32, #tpu.memory_space<vmem>>, vector<8x32xf32>,
    } else {
    }
    %c0 = arith.constant 0 : index
    %c0_1 = arith.constant 0 : index
    %c0_2 = arith.constant 0 : index
    %3 = vector.load %arg1[%c0, %c0_1, %c0_2] : memref<1x8x32xf32, #tpu.memory_space<vmem>>, vector<1x8x32xf32>
    %4 = vector.shape_cast %3 : vector<1x8x32xf32> to vector<8x32xf32>
    %c0_3 = arith.constant 0 : index
    %c0_4 = arith.constant 0 : index
    %c0_5 = arith.constant 0 : index
    %5 = vector.load %arg2[%c0_3, %c0_4, %c0_5] : memref<1x32x8xf32, #tpu.memory_space<vmem>>, vector<1x32x8xf32>
    %6 = vector.shape_cast %5 : vector<1x32x8xf32> to vector<32x8xf32>
    %c0_6 = arith.constant 0 : index
    %c0_7 = arith.constant 0 : index
    %7 = vector.load %arg3[%c0_6, %c0_7] : memref<32x128xf32, #tpu.memory_space<vmem>>, vector<32x128xf32>
    %c0_8 = arith.constant 0 : index
    %c0_9 = arith.constant 0 : index
    %8 = vector.load %arg4[%c0_8, %c0_9] : memref<32x128xf32, #tpu.memory_space<vmem>>, vector<32x128xf32>
    %cst = arith.constant dense<0.000000e+00> : vector<8x128xf32>
    %9 = tpu.matmul %4, %7, %cst {dimension_numbers = #tpu.dot_dimension_numbers<[1], [0], [0], [1], [0, 0, 1, 1], [], []>} : vector<8x32xf32>, vector<32x128xf32>, vector<8x128xf32> -> vector<8x128xf32>
    %c0_10 = arith.constant 0 : index
    %c0_11 = arith.constant 0 : index
    %10 = vector.load %arg5[%c0_10, %c0_11] : memref<1x128xf32, #tpu.memory_space<vmem>>, vector<1x128xf32>
    %11 = vector.broadcast %10 : vector<1x128xf32> to vector<8x128xf32>
    %12 = arith.addf %9, %11 : vector<8x128xf32>
    %c0_12 = arith.constant 0 : index
    %c0_13 = arith.constant 0 : index
    %13 = vector.load %arg9[%c0_12, %c0_13] : memref<8x32xf32, #tpu.memory_space<vmem>>, vector<8x32xf32>
    %c0_14 = arith.constant 0 : index
    %c0_15 = arith.constant 0 : index
    %14 = vector.load %arg10[%c0_14, %c0_15] : memref<8x32xf32, #tpu.memory_space<vmem>>, vector<8x32xf32>
    %cst_16 = arith.constant dense<0.000000e+00> : vector<32x32xf32>
    %15 = tpu.matmul %6, %13, %cst_16 {dimension_numbers = #tpu.dot_dimension_numbers<[1], [0], [0], [1], [0, 0, 1, 1], [], []>} : vector<32x8xf32>, vector<8x32xf32>, vector<32x32xf32> -> vector<32x32xf32>
    %cst_17 = arith.constant dense<0.000000e+00> : vector<32x32xf32>
    %16 = tpu.matmul %6, %14, %cst_17 {dimension_numbers = #tpu.dot_dimension_numbers<[1], [0], [0], [1], [0, 0, 1, 1], [], []>} : vector<32x8xf32>, vector<8x32xf32>, vector<32x32xf32> -> vector<32x32xf32>
    %17 = vector.extract_strided_slice %15 {offsets = [0, 0], sizes = [8, 32], strides = [1, 1]} : vector<32x32xf32> to vector<8x32xf32>
    %18 = vector.extract_strided_slice %15 {offsets = [8, 0], sizes = [8, 32], strides = [1, 1]} : vector<32x32xf32> to vector<8x32xf32>
    %19 = arith.addf %17, %18 : vector<8x32xf32>
    %20 = vector.extract_strided_slice %15 {offsets = [16, 0], sizes = [8, 32], strides = [1, 1]} : vector<32x32xf32> to vector<8x32xf32>
    %21 = arith.addf %19, %20 : vector<8x32xf32>
    %22 = vector.extract_strided_slice %15 {offsets = [24, 0], sizes = [8, 32], strides = [1, 1]} : vector<32x32xf32> to vector<8x32xf32>
    %23 = arith.addf %21, %22 : vector<8x32xf32>
    %cst_18 = arith.constant dense<0.000000e+00> : vector<8x128xf32>
    %24 = tpu.matmul %23, %8, %cst_18 {dimension_numbers = #tpu.dot_dimension_numbers<[1], [0], [0], [1], [0, 0, 1, 1], [], []>} : vector<8x32xf32>, vector<32x128xf32>, vector<8x128xf32> -> vector<8x128xf32>
    %c0_19 = arith.constant 0 : index
    %c0_20 = arith.constant 0 : index
    %25 = vector.load %arg6[%c0_19, %c0_20] : memref<1x128xf32, #tpu.memory_space<vmem>>, vector<1x128xf32>
    %26 = vector.broadcast %25 : vector<1x128xf32> to vector<8x128xf32>
    %27 = arith.addf %24, %26 : vector<8x128xf32>
    %28 = arith.addf %12, %27 : vector<8x128xf32>
    %29 = vector.extract_strided_slice %28 {offsets = [0, 0], sizes = [8, 32], strides = [1, 1]} : vector<8x128xf32> to vector<8x32xf32>
    %30 = arith.negf %29 : vector<8x32xf32>
    %31 = math.exp %30 : vector<8x32xf32>
    %cst_21 = arith.constant 1.000000e+00 : f32
    %32 = vector.broadcast %cst_21 : f32 to vector<8x32xf32>
    %33 = arith.addf %32, %31 : vector<8x32xf32>
    %34 = arith.divf %32, %33 : vector<8x32xf32>
    %35 = vector.extract_strided_slice %28 {offsets = [0, 64], sizes = [8, 32], strides = [1, 1]} : vector<8x128xf32> to vector<8x32xf32>
    %36 = arith.negf %35 : vector<8x32xf32>
    %37 = math.exp %36 : vector<8x32xf32>
    %cst_22 = arith.constant 1.000000e+00 : f32
    %38 = vector.broadcast %cst_22 : f32 to vector<8x32xf32>
    %39 = arith.addf %38, %37 : vector<8x32xf32>
    %40 = arith.divf %38, %39 : vector<8x32xf32>
    %41 = vector.extract_strided_slice %28 {offsets = [0, 96], sizes = [8, 32], strides = [1, 1]} : vector<8x128xf32> to vector<8x32xf32>
    %42 = math.tanh %41 : vector<8x32xf32>
    %43 = vector.extract_strided_slice %12 {offsets = [0, 32], sizes = [8, 32], strides = [1, 1]} : vector<8x128xf32> to vector<8x32xf32>
    %c0_23 = arith.constant 0 : index
    %c32 = arith.constant 32 : index
    %44 = vector.load %arg6[%c0_23, %c32] : memref<1x128xf32, #tpu.memory_space<vmem>>, vector<1x32xf32>
    %45 = vector.broadcast %44 : vector<1x32xf32> to vector<8x32xf32>
    %46 = arith.addf %43, %45 : vector<8x32xf32>
    %47 = vector.extract_strided_slice %8 {offsets = [0, 32], sizes = [32, 32], strides = [1, 1]} : vector<32x128xf32> to vector<32x32xf32>
    %cst_24 = arith.constant dense<0.000000e+00> : vector<32x32xf32>
    %48 = tpu.matmul %15, %47, %cst_24 {dimension_numbers = #tpu.dot_dimension_numbers<[1], [0], [0], [1], [0, 0, 1, 1], [], []>} : vector<32x32xf32>, vector<32x32xf32>, vector<32x32xf32> -> vector<32x32xf32>
    %49 = tpu.concatenate %46, %46, %46, %46 in 0 : vector<8x32xf32>, vector<8x32xf32>, vector<8x32xf32>, vector<8x32xf32> -> vector<32x32xf32>
    %50 = arith.addf %49, %48 : vector<32x32xf32>
    %51 = arith.negf %50 : vector<32x32xf32>
    %52 = math.exp %51 : vector<32x32xf32>
    %cst_25 = arith.constant 1.000000e+00 : f32
    %53 = vector.broadcast %cst_25 : f32 to vector<32x32xf32>
    %54 = arith.addf %53, %52 : vector<32x32xf32>
    %55 = arith.divf %53, %54 : vector<32x32xf32>
    %56 = arith.mulf %55, %16 : vector<32x32xf32>
    %57 = vector.extract_strided_slice %56 {offsets = [0, 0], sizes = [8, 32], strides = [1, 1]} : vector<32x32xf32> to vector<8x32xf32>
    %58 = vector.extract_strided_slice %56 {offsets = [8, 0], sizes = [8, 32], strides = [1, 1]} : vector<32x32xf32> to vector<8x32xf32>
    %59 = arith.addf %57, %58 : vector<8x32xf32>
    %60 = vector.extract_strided_slice %56 {offsets = [16, 0], sizes = [8, 32], strides = [1, 1]} : vector<32x32xf32> to vector<8x32xf32>
    %61 = arith.addf %59, %60 : vector<8x32xf32>
    %62 = vector.extract_strided_slice %56 {offsets = [24, 0], sizes = [8, 32], strides = [1, 1]} : vector<32x32xf32> to vector<8x32xf32>
    %63 = arith.addf %61, %62 : vector<8x32xf32>
    %64 = arith.mulf %34, %42 : vector<8x32xf32>
    %65 = arith.addf %64, %63 : vector<8x32xf32>
    %66 = math.tanh %65 : vector<8x32xf32>
    %67 = arith.mulf %40, %66 : vector<8x32xf32>
    %c0_26 = arith.constant 0 : index
    %c0_27 = arith.constant 0 : index
    %68 = vector.load %arg9[%c0_26, %c0_27] : memref<8x32xf32, #tpu.memory_space<vmem>>, vector<8x32xf32>
    tpu.vector_store %arg9[%c0_26, %c0_27], %67 {strides = array<i32>} : memref<8x32xf32, #tpu.memory_space<vmem>>, vector<8x32xf32>,
    %c0_28 = arith.constant 0 : index
    %c0_29 = arith.constant 0 : index
    %69 = vector.load %arg10[%c0_28, %c0_29] : memref<8x32xf32, #tpu.memory_space<vmem>>, vector<8x32xf32>
    tpu.vector_store %arg10[%c0_28, %c0_29], %65 {strides = array<i32>} : memref<8x32xf32, #tpu.memory_space<vmem>>, vector<8x32xf32>,
    %c0_30 = arith.constant 0 : index
    %c0_31 = arith.constant 0 : index
    %70 = vector.load %arg7[%c0_30, %c0_31] : memref<8x32xf32, #tpu.memory_space<vmem>>, vector<8x32xf32>
    tpu.vector_store %arg7[%c0_30, %c0_31], %67 {strides = array<i32>} : memref<8x32xf32, #tpu.memory_space<vmem>>, vector<8x32xf32>,
    %c0_32 = arith.constant 0 : index
    %c0_33 = arith.constant 0 : index
    %71 = vector.load %arg8[%c0_32, %c0_33] : memref<8x32xf32, #tpu.memory_space<vmem>>, vector<8x32xf32>
    tpu.vector_store %arg8[%c0_32, %c0_33], %65 {strides = array<i32>} : memref<8x32xf32, #tpu.memory_space<vmem>>, vector<8x32xf32>,
    return
  }
  func.func @transform_0(%arg0: i32) -> (i32, i32, i32) {
    %c0_i32 = arith.constant 0 : i32
    %c0_i32_0 = arith.constant 0 : i32
    %c0_i32_1 = arith.constant 0 : i32
    return %arg0, %c0_i32, %c0_i32_0 : i32, i32, i32
  }
  func.func @transform_1(%arg0: i32) -> (i32, i32, i32) {
    %c0_i32 = arith.constant 0 : i32
    %c0_i32_0 = arith.constant 0 : i32
    %c0_i32_1 = arith.constant 0 : i32
    return %arg0, %c0_i32, %c0_i32_0 : i32, i32, i32
  }
  func.func @transform_2(%arg0: i32) -> (i32, i32) {
    %c0_i32 = arith.constant 0 : i32
    %c0_i32_0 = arith.constant 0 : i32
    %c0_i32_1 = arith.constant 0 : i32
    return %c0_i32, %c0_i32_0 : i32, i32
  }
  func.func @transform_3(%arg0: i32) -> (i32, i32) {
    %c0_i32 = arith.constant 0 : i32
    %c0_i32_0 = arith.constant 0 : i32
    %c0_i32_1 = arith.constant 0 : i32
    return %c0_i32, %c0_i32_0 : i32, i32
  }
  func.func @transform_4(%arg0: i32) -> (i32, i32) {
    %c0_i32 = arith.constant 0 : i32
    %c0_i32_0 = arith.constant 0 : i32
    %c0_i32_1 = arith.constant 0 : i32
    return %c0_i32, %c0_i32_0 : i32, i32
  }
  func.func @transform_5(%arg0: i32) -> (i32, i32) {
    %c0_i32 = arith.constant 0 : i32
    %c0_i32_0 = arith.constant 0 : i32
    %c0_i32_1 = arith.constant 0 : i32
    return %c0_i32, %c0_i32_0 : i32, i32
  }
  func.func @transform_6(%arg0: i32) -> (i32, i32) {
    %c0_i32 = arith.constant 0 : i32
    %c0_i32_0 = arith.constant 0 : i32
    %c0_i32_1 = arith.constant 0 : i32
    return %c0_i32, %c0_i32_0 : i32, i32
  }
  func.func @transform_7(%arg0: i32) -> (i32, i32) {
    %c0_i32 = arith.constant 0 : i32
    %c0_i32_0 = arith.constant 0 : i32
    %c0_i32_1 = arith.constant 0 : i32
    return %c0_i32, %c0_i32_0 : i32, i32
  }
}

</mosaic_0001>

<bundles_post_ra>
// kernel: _tree_lstm_fused.1
= control target key start
LH: loop header
LB: loop body
LE: loop exit
PB: predicated region body
PF: predicated region fallthrough
CT: control target
= control target key end

     0   :  { %13 = vsyncpa [#allocation5], 0  ;;  %s1082_s0 = inlined_call_operand.vmem [shape: f32[3,8,32], index: 0, kind: input, shape index: {}]   ;;  %s1083_s1 = inlined_call_operand.vmem [shape: f32[3,32,8], index: 1, kind: input, shape index: {}]   ;;  %s1084_s2 = inlined_call_operand.vmem [shape: f32[32,128], index: 2, kind: input, shape index: {}]   ;;  %s1085_s3 = inlined_call_operand.vmem [shape: f32[32,128], index: 3, kind: input, shape index: {}]   ;;  %s1086_s4 = inlined_call_operand.vmem [shape: f32[1,128], index: 4, kind: input, shape index: {}]   ;;  %s1087_s5 = inlined_call_operand.vmem [shape: f32[1,128], index: 5, kind: input, shape index: {}]   ;;  %s1088_s6 = inlined_call_operand.hbm [shape: f32[8,32], index: 6, kind: output, shape index: {0}]   ;;  %s1089_s7 = inlined_call_operand.hbm [shape: f32[8,32], index: 7, kind: output, shape index: {1}]  }
   0x1   :  { %14 = vsyncpa [#allocation7], 0  ;;  %s952_s24 = smov 0  }
   0x2 LB: > { %s958_s25 = sadd.s32 4294967295, %s904_s24   ;;  %p741_p0 = scmp.ge.s32.totalorder %s904_s24, 1  ;;  %s904_s24 = sphi %s952_s24, %s20_s24  }
   0x3   : > { %p241_p1 = scmp.lt.s32.totalorder %s904_s24, 4 }
   0x5   : > { %p242_p2 = pnand %p741_p0, %p241_p1 }
   0x6   : > { %p272_p3 = scmp.lt.s32.totalorder (!%p242_p2), %s958_s25, 2  ;;  %p745_p4 = scmp.ne.s32.totalorder (!%p242_p2), %s958_s25, 0 }
   0x7   : > { %245 = sbr.rel (%p242_p2) target bundleno = 780 (0x30c), region = 44 }
   0xc   : > { %s273_s26 = scalar_select %p272_p3, %s958_s25, 2 }
   0xd   : > { %284 = sbr.rel (%p745_p4) target bundleno = 21 (0x15), region = 48 }
   0xe   : > { %s742_s27 = sshll.u32 %s273_s26, 3  ;;  %s771_s28 = sshll.u32 %s273_s26, 5 }
   0xf   : > { %s967_s8 = scalar_lea.vmem %s1082_s0, %s742_s27  ;;  %s280_s11 = scalar_lea.vmem %s1083_s1, %s771_s28 }
  0x12   : > { %vm285_vm0 = vcmask 261120   ;;  %v906_v0 = vmov 0.0  }
  0x13   : > { %286 = vst.msk [vmem:[#allocation2] sm:$0xff] %vm285_vm0, %v906_v0 }
  0x14   : > { %287 = vst.msk [vmem:[#allocation3] sm:$0xff] %vm285_vm0, %v906_v0 }
  0x15 PF: > { %v289_v2 = vld [vmem:[%s280_s11] sm:$0xff]  ;;  %vm331_vm1 = vcmask 64512   ;;  %v299_v3 = vld [vmem:[%s1085_s3 + $0x10] sm:$0xff]  ;;  %v300_v4 = vld [vmem:[%s1085_s3 + $0x18] sm:$0xff]  ;;  %s907_s16 = smov 96   ;;  %vm305_vm2 = vcmask 261120  }
  0x16   : > { %v798_v5 = vpack.i.bf16 %v299_v3, %v300_v4  ;;  %v297_v6 = vld [vmem:[%s1085_s3] sm:$0xff]  ;;  %v298_v7 = vld [vmem:[%s1085_s3 + $0x8] sm:$0xff]  ;;  %v291_v10 = vld [vmem:[%s280_s11 + $0x10] sm:$0xff]  ;;  %s909_s13 = smov 64   ;;  %p780_p5 = scmp.eq.s32.totalorder %s958_s25, 2 }
  0x17   : > { %v290_v8 = vld [vmem:[%s280_s11 + $0x8] sm:$0xff]  ;;  %v803_v9 = vpack.i.bf16 %v297_v6, %v298_v7  ;;  %v292_v11 = vld [vmem:[%s280_s11 + $0x18] sm:$0xff]  ;;  %v295_v14 = vld [vmem:[%s1084_s2 + $0x10] sm:$0xff]  ;;  %s910_s17 = smov [#allocation6]   ;;  %s911_s19 = smov [#allocation4]  }
  0x18   : > { %799 = vrot.lane.b32.xlu0 %v798_v5, %s907_s16  ;;  %v296_v13 = vld [vmem:[%s1084_s2 + $0x18] sm:$0xff]  ;;  %v294_v15 = vld [vmem:[%s1084_s2 + $0x8] sm:$0xff]  ;;  %v293_v16 = vld [vmem:[%s1084_s2] sm:$0xff]  ;;  %s672_s18 = sshll.u32 %s910_s17, 4  ;;  %s660_s20 = sshll.u32 %s911_s19, 4  ;;  %s673_s18 = int_to_ptr.vmem [resolvable:$true] %s672_s18  ;;  %s661_s20 = int_to_ptr.vmem [resolvable:$true] %s660_s20 }
  0x19   : > { %321 = vmatpush.msra.mxu3 %v296_v13  ;;  %v288_v17 = vld [vmem:[%s967_s8] sm:$0xff]  ;;  %s908_s8 = smov 32   ;;  %s662_s23 = sshll.u32 %s1088_s6, 4  ;;  %s663_s23 = int_to_ptr.hbm [resolvable:$true] %s662_s23 }
  0x1a   : > { %v329_v1 = vld [vmem:[#allocation2] sm:$0xff] }
  0x1b   : > { %359 = vmatpush.msra.mxu1 %v329_v1  ;;  %v330_v12 = vld [vmem:[#allocation3] sm:$0xff]  ;;  %322 = vmatpush.msra.mxu3 %v295_v14  ;;  %v808_v33 = vld [vmem:[%s1086_s4] ss:$0 sm:$0xff] }
  0x1c   : > { %747 = vmatmul.msk.f32.vlgmr.msra.gmra.mxu1 %vm331_vm1, %v289_v2  ;;  %388 = vmatpush.msra.mxu2 %v330_v12  ;;  %v809_v36 = vld [vmem:[%s1087_s5] ss:$0 sm:$0xff] }
  0x1d   : > { %751 = vmatmul.msk.f32.vlgmr.msra.gmra.mxu2 %vm331_vm1, %v289_v2  ;;  %323 = vmatpush.msra.mxu3 %v294_v15 }
  0x1f   : > { %324 = vmatpush.msra.mxu3 %v293_v16 }
  0x20   : > { %804 = vrot.lane.b32.xlu0 %v803_v9, %s907_s16  ;;  %746 = vmatmul.msk.f32.vlgmr.msra.gmra.mxu3 %vm305_vm2, %v288_v17 }
  0x21   : > { %424 = vmatpush.msrb.mxu3 %v300_v4 }
  0x23   : > { %425 = vmatpush.msrb.mxu3 %v299_v3 }
  0x24   : > { %748 = vmatmul.msk.f32.gmra.mxu1 %vm331_vm1, %v290_v8 }
  0x25   : > { %752 = vmatmul.msk.f32.gmra.mxu2 %vm331_vm1, %v290_v8  ;;  %426 = vmatpush.msrb.mxu3 %v298_v7 }
  0x27   : > { %427 = vmatpush.msrb.mxu3 %v297_v6 }
  0x2c   : > { %749 = vmatmul.msk.f32.gmra.mxu1 %vm331_vm1, %v291_v10 }
  0x2d   : > { %753 = vmatmul.msk.f32.gmra.mxu2 %vm331_vm1, %v291_v10 }
  0x34   : > { %750 = vmatmul.msk.f32.gmra.mxu1 %vm331_vm1, %v292_v11 }
  0x35   : > { %754 = vmatmul.msk.f32.gmra.mxu2 %vm331_vm1, %v292_v11 }
  0x8a   : > { %v800_v18 = vpop.permute.xlu0 %799 }
  0x8b   : > { %v801_v19 = vunpack.i.l.bf16 %v800_v18  ;;  %v802_v20 = vunpack.i.h.bf16 %v800_v18 }
  0x8d   : > { %494 = vmatpush.msra.mxu0 %v801_v19 }
  0x8f   : > { %495 = vmatpush.msra.mxu0 %v802_v20 }
  0x92   : > { %v805_v21 = vpop.permute.xlu0 %804 }
  0x93   : > { %v806_v23 = vunpack.i.l.bf16 %v805_v21  ;;  %v807_v24 = vunpack.i.h.bf16 %v805_v21 }
  0x95   : > { %496 = vmatpush.msra.mxu0 %v806_v23 }
  0x97   : > { %497 = vmatpush.msra.mxu0 %v807_v24 }
  0x99   : > { %v361_v22 = vpop.f32.mrf.mxu1 }
  0x9a   : > { %757 = vmatmul.msk.f32.vlgmr.msra.gmra.mxu0 %vm305_vm2, %v361_v22 }
  0xa0   : > { %v390_v31 = vpop.f32.mrf.mxu2 }
  0xa1   : > { %v364_v25 = vpop.f32.mrf.mxu1  ;;  %611 = vrot.lane.b32.xlu0 %v390_v31, %s908_s8 }
  0xa2   : > { %758 = vmatmul.msk.f32.gmra.mxu0 %vm305_vm2, %v364_v25  ;;  %v402_v27 = vadd.f32 %v364_v25, %v361_v22 }
  0xa3   : > { %v326_v34 = vpop.f32.mrf.mxu3 }
  0xa4   : > { %v327_v35 = vadd.f32 %v808_v33, %v326_v34 }
  0xa6   : > { %v453_v38 = vadd.f32 %v809_v36, %v327_v35 }
  0xa8   : > { %v393_v32 = vpop.f32.mrf.mxu2 }
  0xa9   : > { %v367_v26 = vpop.f32.mrf.mxu1 }
  0xaa   : > { %759 = vmatmul.msk.f32.gmra.mxu0 %vm305_vm2, %v367_v26  ;;  %v403_v28 = vadd.f32 %v402_v27, %v367_v26 }
  0xb0   : > { %v396_v37 = vpop.f32.mrf.mxu2 }
  0xb1   : > { %v370_v29 = vpop.f32.mrf.mxu1 }
  0xb2   : > { %v404_v30 = vadd.f32 %v403_v28, %v370_v29  ;;  %760 = vmatmul.msk.f32.gmra.mxu0 %vm305_vm2, %v370_v29 }
  0xb4   : > { %755 = vmatmul.msk.f32.vlgmr.msrb.gmra.mxu3 %vm305_vm2, %v404_v30 }
  0xb8   : > { %v399_v39 = vpop.f32.mrf.mxu2 }
  0xb9   : > { %617 = vrot.lane.b32.xlu0 %v399_v39, %s908_s8 }
 0x113   : > { %v612_v28 = vpop.permute.xlu0 %611 }
 0x117   : > { %v499_v40 = vpop.f32.mrf.mxu0 }
 0x118   : > { %515 = vrot.lane.b32.xlu1 %v499_v40, %s908_s8 }
 0x11f   : > { %v502_v41 = vpop.f32.mrf.mxu0 }
 0x120   : > { %517 = vrot.lane.b32.xlu1 %v502_v41, %s908_s8 }
 0x127   : > { %v505_v42 = vpop.f32.mrf.mxu0 }
 0x128   : > { %519 = vrot.lane.b32.xlu2 %v505_v42, %s908_s8  ;;  %613 = vrot.lane.b32.xlu1 %v393_v32, %s908_s8 }
 0x12f   : > { %v508_v43 = vpop.f32.mrf.mxu0 }
 0x130   : > { %521 = vrot.lane.b32.xlu2 %v508_v43, %s908_s8 }
 0x137   : > { %v429_v44 = vpop.f32.mrf.mxu3 }
 0x138   : > { %v430_v45 = vadd.f32 %v809_v36, %v429_v44  ;;  %615 = vrot.lane.b32.xlu2 %v396_v37, %s908_s8 }
 0x13a   : > { %v1020_v46 = vadd.f32 %v430_v45, %v327_v35 }
 0x13c   : > { %810 = vtanh.f32 %v1020_v46 }
 0x142   : > { %v811_v47 = vpop.eup %810 }
 0x143   : > { %631 = vrot.lane.b32.xlu1 %v811_v47, %s908_s8 }
 0x182   : > { %v520_v48 = vpop.permute.xlu2 %519 }
 0x183   : > { %v529_v49 = vadd.f32 %v520_v48, %v453_v38 }
 0x185   : > { %v763_v50 = vmul.f32 -1.442695, %v529_v49 }
 0x187   : > { %812 = vpow2.f32 %v763_v50 }
 0x18a   : > { %v516_v51 = vpop.permute.xlu1 %515  ;;  %v522_v52 = vpop.permute.xlu2 %521 }
 0x18b   : > { %v527_v53 = vadd.f32 %v516_v51, %v453_v38  ;;  %v530_v54 = vadd.f32 %v522_v52, %v453_v38 }
 0x18d   : > { %v813_v55 = vpop.eup %812  ;;  %v761_v56 = vmul.f32 -1.442695, %v527_v53  ;;  %v764_v57 = vmul.f32 -1.442695, %v530_v54  ;;  %v618_v53 = vpop.permute.xlu0 %617 }
 0x18e   : > { %v545_v58 = vadd.f32 1.0, %v813_v55 }
 0x18f   : > { %814 = vpow2.f32 %v761_v56 }
 0x190   : > { %816 = vpow2.f32 %v764_v57  ;;  %v586_v15 = vand.u32 2147483647, %v545_v58  ;;  %vm582_vm3 = vweird.f32 %v545_v58  ;;  %v588_v17 = vand.u32 2147483648, %v545_v58 }
 0x191   : > { %818 = vrcp.f32 %v545_v58 }
 0x192   : > { %v518_v59 = vpop.permute.xlu1 %517  ;;  %vm1031_vm7 = vcmp.eq.f32.partialorder %v586_v15, 8.507059e+37  ;;  %v589_v27 = vor.u32 1.1754944e-38, %v588_v17  ;;  %v616_v52 = vpop.permute.xlu2 %615 }
 0x193   : > { %v528_v60 = vadd.f32 %v518_v59, %v453_v38 }
 0x195   : > { %v815_v61 = vpop.eup %814  ;;  %v762_v62 = vmul.f32 -1.442695, %v528_v60  ;;  %v756_v60 = vmul.f32 -1.442695, %v1020_v46 }
 0x196   : > { %v543_v63 = vadd.f32 1.0, %v815_v61  ;;  %v817_v0 = vpop.eup %816 }
 0x197   : > { %820 = vpow2.f32 %v762_v62  ;;  %v1023_v1 = vadd.f32 1.0, %v817_v0  ;;  %v819_v2 = vpop.eup %818 }
 0x198   : > { %822 = vrcp.f32 %v543_v63  ;;  %v578_v4 = vmul.f32 %v819_v2, %v545_v58  ;;  %vm583_vm4 = vweird.f32 %v819_v2  ;;  %v556_v21 = vand.u32 2147483647, %v543_v63 }
 0x199   : > { %824 = vrcp.f32 %v1023_v1  ;;  %v558_v22 = vand.u32 2147483648, %v543_v63  ;;  %vm1027_vm6 = vmor %vm582_vm3, %vm583_vm4  ;;  %vm552_vm8 = vweird.f32 %v543_v63  ;;  %vm597_vm13 = vweird.f32 %v1023_v1 }
 0x19a   : > { %v579_v9 = vsub.f32 1.0, %v578_v4  ;;  %vm557_vm12 = vcmp.eq.f32.partialorder %v556_v21, 8.507059e+37  ;;  %v603_v36 = vand.u32 2147483648, %v1023_v1  ;;  %v601_v40 = vand.u32 2147483647, %v1023_v1  ;;  %v614_v47 = vpop.permute.xlu1 %613 }
 0x19b   : > { %v559_v35 = vor.u32 1.1754944e-38, %v558_v22 }
 0x19c   : > { %v580_v14 = vmul.f32 %v819_v2, %v579_v9  ;;  %v604_v49 = vor.u32 1.1754944e-38, %v603_v36  ;;  %vm602_vm3 = vcmp.eq.f32.partialorder %v601_v40, 8.507059e+37 }
 0x19d   : > { %v821_v3 = vpop.eup %820 }
 0x19e   : > { %v823_v5 = vpop.eup %822  ;;  %v544_v6 = vadd.f32 1.0, %v821_v3  ;;  %v581_v23 = vadd.f32 %v819_v2, %v580_v14 }
 0x19f   : > { %v548_v7 = vmul.f32 %v823_v5, %v543_v63  ;;  %v825_v8 = vpop.eup %824  ;;  %vm553_vm5 = vweird.f32 %v823_v5 }
 0x1a0   : > { %826 = vrcp.f32 %v544_v6  ;;  %v593_v11 = vmul.f32 %v825_v8, %v1023_v1  ;;  %vm1035_vm9 = vmor %vm552_vm8, %vm553_vm5  ;;  %v571_v30 = vand.u32 2147483647, %v544_v6  ;;  %v573_v31 = vand.u32 2147483648, %v544_v6 }
 0x1a1   : > { %v549_v10 = vsub.f32 1.0, %v548_v7  ;;  %vm598_vm10 = vweird.f32 %v825_v8  ;;  %v585_v37 = vsel %vm1027_vm6, %v819_v2, %v581_v23  ;;  %vm567_vm14 = vweird.f32 %v544_v6 }
 0x1a2   : > { %v594_v13 = vsub.f32 1.0, %v593_v11  ;;  %vm1045_vm15 = vmor %vm597_vm13, %vm598_vm10  ;;  %v574_v42 = vor.u32 1.1754944e-38, %v573_v31  ;;  %vm572_vm1 = vcmp.eq.f32.partialorder %v571_v30, 8.507059e+37  ;;  %v590_v45 = vsel %vm1031_vm7, %v589_v27, %v585_v37 }
 0x1a3   : > { %v550_v12 = vmul.f32 %v823_v5, %v549_v10  ;;  %v625_v55 = vmul.f32 %v616_v52, %v590_v45  ;;  %828 = vpow2.f32 %v756_v60 }
 0x1a4   : > { %v595_v20 = vmul.f32 %v825_v8, %v594_v13 }
 0x1a5   : > { %v551_v18 = vadd.f32 %v823_v5, %v550_v12 }
 0x1a6   : > { %v827_v16 = vpop.eup %826  ;;  %v596_v34 = vadd.f32 %v825_v8, %v595_v20 }
 0x1a7   : > { %v563_v19 = vmul.f32 %v827_v16, %v544_v6  ;;  %v555_v32 = vsel %vm1035_vm9, %v823_v5, %v551_v18  ;;  %vm568_vm11 = vweird.f32 %v827_v16 }
 0x1a8   : > { %v560_v41 = vsel %vm557_vm12, %v559_v35, %v555_v32  ;;  %vm569_vm0 = vmor %vm567_vm14, %vm568_vm11  ;;  %v600_v44 = vsel %vm1045_vm15, %v825_v8, %v596_v34 }
 0x1a9   : > { %v564_v26 = vsub.f32 1.0, %v563_v19  ;;  %v623_v50 = vmul.f32 %v612_v28, %v560_v41  ;;  %v605_v54 = vsel %vm602_vm3, %v604_v49, %v600_v44  ;;  %v829_v61 = vpop.eup %828 }
 0x1aa   : > { %v626_v57 = vmul.f32 %v618_v53, %v605_v54  ;;  %v436_v62 = vadd.f32 1.0, %v829_v61 }
 0x1ab   : > { %v565_v33 = vmul.f32 %v827_v16, %v564_v26 }
 0x1ac   : > { %830 = vrcp.f32 %v436_v62  ;;  %v448_v4 = vand.u32 2147483648, %v436_v62  ;;  %vm442_vm5 = vweird.f32 %v436_v62  ;;  %v446_v5 = vand.u32 2147483647, %v436_v62 }
 0x1ad   : > { %v566_v38 = vadd.f32 %v827_v16, %v565_v33 }
 0x1ae   : > { %v449_v8 = vor.u32 1.1754944e-38, %v448_v4  ;;  %vm447_vm7 = vcmp.eq.f32.partialorder %v446_v5, 8.507059e+37 }
 0x1af   : > { %v570_v43 = vsel %vm569_vm0, %v827_v16, %v566_v38 }
 0x1b0   : > { %v575_v48 = vsel %vm572_vm1, %v574_v42, %v570_v43 }
 0x1b1   : > { %v624_v51 = vmul.f32 %v614_v47, %v575_v48 }
 0x1b2   : > { %v831_v63 = vpop.eup %830 }
 0x1b3   : > { %v627_v56 = vadd.f32 %v624_v51, %v623_v50  ;;  %v438_v0 = vmul.f32 %v831_v63, %v436_v62  ;;  %vm443_vm4 = vweird.f32 %v831_v63 }
 0x1b4   : > { %vm444_vm6 = vmor %vm442_vm5, %vm443_vm4 }
 0x1b5   : > { %v628_v58 = vadd.f32 %v627_v56, %v625_v55  ;;  %v439_v1 = vsub.f32 1.0, %v438_v0  ;;  %v632_v7 = vpop.permute.xlu1 %631 }
 0x1b7   : > { %v629_v59 = vadd.f32 %v628_v58, %v626_v57  ;;  %v440_v2 = vmul.f32 %v831_v63, %v439_v1 }
 0x1b9   : > { %636 = vrot.lane.b32.xlu2 %v629_v59, %s907_s16  ;;  %v441_v3 = vadd.f32 %v831_v63, %v440_v2  ;;  %s674_s16 = sshll.u32 %s1089_s7, 4  ;;  %s675_s16 = int_to_ptr.hbm [resolvable:$true] %s674_s16 }
 0x1bb   : > { %v445_v6 = vsel %vm444_vm6, %v831_v63, %v441_v3 }
 0x1bc   : > { %v450_v46 = vsel %vm447_vm7, %v449_v8, %v445_v6 }
 0x1bd   : > { %v634_v9 = vmul.f32 %v632_v7, %v450_v46 }
 0x213   : > { %v637_v10 = vpop.permute.xlu2 %636 }
 0x214   : > { %v639_v11 = vadd.f32 %v637_v10, %v634_v9 }
 0x216   : > { %832 = vtanh.f32 %v639_v11  ;;  %651 = vst.msk [vmem:[#allocation3] sm:$0xff] %vm305_vm2, %v639_v11 }
 0x217   : > { %653 = vst.msk [vmem:[#allocation6] sm:$0xff] %vm305_vm2, %v639_v11 }
 0x218   : > { %775 = dma.vmem_to_hbm [thread:$0]  (%p780_p5), %s673_s18, 128, %s675_s16, [#allocation7]  }
 0x21c   : > { %v833_v12 = vpop.eup %832 }
 0x21d   : > { %642 = vrot.lane.b32.xlu0 %v833_v12, %s909_s13 }
 0x28f   : > { %v643_v13 = vpop.permute.xlu0 %642 }
 0x290   : > { %v645_v14 = vmul.f32 %v643_v13, %v450_v46 }
 0x292   : > { %647 = vrot.lane.b32.xlu1 %v645_v14, %s909_s13 }
 0x304   : > { %v648_v15 = vpop.permute.xlu1 %647 }
 0x305   : > { %650 = vst.msk [vmem:[#allocation2] sm:$0xff] %vm305_vm2, %v648_v15 }
 0x306   : > { %652 = vst.msk [vmem:[#allocation4] sm:$0xff] %vm305_vm2, %v648_v15 }
 0x307   : > { %773 = dma.vmem_to_hbm [thread:$0]  (%p780_p5), %s661_s20, 128, %s663_s23, [#allocation5]  }
 0x308   : > { %895 = dma.done.wait (%p780_p5), [#allocation5], 128  }
 0x309   : > { %897 = vsyncadd (%p780_p5), [#allocation5], 4294967168 }
 0x30a   : > { %899 = dma.done.wait (%p780_p5), [#allocation7], 128  }
 0x30b   : > { %901 = vsyncadd (%p780_p5), [#allocation7], 4294967168 }
 0x30c PF: > { %s20_s24 = sadd.s32 1, %s904_s24  }
 0x30d   : > { %p17_p6 = scmp.ge.s32.totalorder %s20_s24, 5  }
 0x30f   :  { %19 = sbr.rel (!%p17_p6) target bundleno = 2 (0x2), region = 86 }
 0x314   :  { %693 = vsyncpa [#allocation5], 1 }
 0x315   :  { %695 = vsyncpa [#allocation5 + $0x1], 1 }
 0x316   :  { %696 = vsyncpa [#allocation7], 1 }

</bundles_post_ra>
